<compile_context>
chip_gen: v7x
topology: tpu7x:2x2x1
jax: 0.10.0
libtpu: 0.0.40
codegen_flags: <defaults>
</compile_context>

<pallas_src>
import jax
import jax.numpy as jnp
from jax.experimental import pallas as pl
from jax.experimental.pallas import tpu as pltpu


# ----------------------------------------------------------------------------
# Kernel
# ----------------------------------------------------------------------------
def _fused_heads_matmul_kernel(x_ref, w_ref, b_ref, o_ref, acc_ref):
    """One (i, j, k) grid step of Y = X @ W_all + b_all.

    x_ref : (tm, tk)   activations tile
    w_ref : (tk, tn)   fused-weight tile
    b_ref : (1,  tn)   fused bias tile (f32, resident across the K loop)
    o_ref : (tm, tn)   output tile
    acc_ref: (tm, tn)  f32 VMEM accumulator carried across the K (last) axis
    """
    k = pl.program_id(2)

    @pl.when(k == 0)
    def _():
        # Fold the bias into the accumulator init: saves the epilogue add.
        acc_ref[...] = jnp.broadcast_to(
            b_ref[...].astype(jnp.float32), acc_ref.shape
        )

    acc_ref[...] += jnp.dot(
        x_ref[...], w_ref[...], preferred_element_type=jnp.float32
    )

    @pl.when(k == pl.num_programs(2) - 1)
    def _():
        o_ref[...] = acc_ref[...].astype(o_ref.dtype)


# ----------------------------------------------------------------------------
# Tiling helpers
# ----------------------------------------------------------------------------
def _round_up(x, m):
    return ((x + m - 1) // m) * m


def _pick_tile(dim_padded, preferred, align):
    """Pick an aligned tile for `dim_padded` (already a multiple of `align`).

    Returns (tile, new_padded_dim). Prefers the largest aligned divisor of
    `dim_padded` that is <= preferred; since `align` always divides
    `dim_padded` a divisor is always found, but as a last resort we use the
    preferred-size tile and pad the dimension up to a multiple of it (never a
    giant untiled block).
    """
    if dim_padded <= preferred:
        return dim_padded, dim_padded
    t = (preferred // align) * align
    while t >= align:
        if dim_padded % t == 0:
            return t, dim_padded
        t -= align
    t = (preferred // align) * align
    return t, _round_up(dim_padded, t)


# ----------------------------------------------------------------------------
# Wrappers
# ----------------------------------------------------------------------------
def multihead_adapter_fused(
    x,
    weights_pt,
    biases_pt,
    *,
    compute_dtype=None,
    out_dtype=None,
    tm_pref=512,
    tn_pref=1024,
    tk_pref=512,
):
    """Fused multi-head linear.

    Args:
      x:          (B, D_in) feature tensor shared by all heads.
      weights_pt: (H, D_out, D_in) stacked head weights in PyTorch layout.
      biases_pt:  (H, D_out) stacked head biases.
      compute_dtype: optional narrower streaming dtype (e.g. jnp.bfloat16);
        MXU accumulation and the bias stay f32.
      out_dtype: output dtype (defaults to x.dtype, independent of
        compute_dtype).

    Returns:
      (B, H*D_out) fused output; head h occupies columns [h*D_out, (h+1)*D_out).
    """
    H, D_out, D_in = weights_pt.shape
    B = x.shape[0]
    N = H * D_out

    if out_dtype is None:
        out_dtype = x.dtype
    if compute_dtype is None:
        compute_dtype = x.dtype

    itemsize_c = jnp.dtype(compute_dtype).itemsize
    itemsize_o = jnp.dtype(out_dtype).itemsize
    # Packed-sublane multiple of the streaming dtype: 8 f32, 16 bf16, 32 int8.
    m_align = 8 * max(1, 4 // itemsize_c)

    # Glue (once, outside the kernel): fuse heads into the N axis.
    #   (H, D_out, D_in) -> (D_in, H, D_out) -> (D_in, H*D_out)
    w_all = jnp.transpose(weights_pt, (2, 0, 1)).reshape(D_in, N)
    b_all = biases_pt.reshape(1, N).astype(jnp.float32)

    x_c = x.astype(compute_dtype)
    w_c = w_all.astype(compute_dtype)

    # Pad to alignment (lane-dense N, 128-aligned K, packed-sublane M), then
    # pick tiles that divide the padded extents exactly.
    M_p = _round_up(B, m_align)
    K_p = _round_up(D_in, 128)
    N_p = _round_up(N, 128)

    tm, M_p = _pick_tile(M_p, tm_pref, m_align)
    tk, K_p = _pick_tile(K_p, tk_pref, 128)
    tn, N_p = _pick_tile(N_p, tn_pref, 128)

    # Megacore: if there is only one parallel (i, j) block, split N evenly so
    # v7x's second TensorCore is not idle (only when it splits cleanly).
    if (M_p // tm) * (N_p // tn) == 1 and N_p >= 256 and (N_p // 2) % 128 == 0:
        tn = N_p // 2

    # Keep the double-buffered working set comfortably inside scoped VMEM on
    # every generation (<= ~24 MiB; v7x physical is 64 MiB).
    def _footprint(tm_, tn_, tk_):
        return (
            2 * (tm_ * tk_ + tk_ * tn_) * itemsize_c  # double-buffered X, W
            + 2 * tm_ * tn_ * itemsize_o              # double-buffered out
            + tm_ * tn_ * 4                           # f32 accumulator
            + 2 * tn_ * 4                             # bias row
        )

    budget = 24 << 20
    while _footprint(tm, tn, tk) > budget:
        if tk >= 256 and (tk // 2) % 128 == 0:
            tk //= 2
        elif tm >= 2 * m_align and (tm // 2) % m_align == 0:
            tm //= 2
        elif tn >= 256 and (tn // 2) % 128 == 0:
            tn //= 2
        else:
            break

    # Zero-pad inputs; padded K columns contribute nothing, padded M rows and
    # N columns are sliced off below.
    if (M_p, K_p) != (B, D_in):
        x_c = jnp.pad(x_c, ((0, M_p - B), (0, K_p - D_in)))
    if (K_p, N_p) != (D_in, N):
        w_c = jnp.pad(w_c, ((0, K_p - D_in), (0, N_p - N)))
    if N_p != N:
        b_all = jnp.pad(b_all, ((0, 0), (0, N_p - N)))

    grid = (M_p // tm, N_p // tn, K_p // tk)
    gm, gn, _ = grid

    cost = pl.CostEstimate(
        flops=2 * M_p * K_p * N_p,
        transcendentals=0,
        bytes_accessed=(
            gn * M_p * K_p * itemsize_c     # X re-streamed once per N panel
            + gm * K_p * N_p * itemsize_c   # W re-streamed once per M panel
            + gm * N_p * 4                  # bias
            + M_p * N_p * itemsize_o        # output writeback
        ),
    )

    vmem_limit = int(min(max(2 * _footprint(tm, tn, tk), 32 << 20), 56 << 20))

    out = pl.pallas_call(
        _fused_heads_matmul_kernel,
        out_shape=jax.ShapeDtypeStruct((M_p, N_p), out_dtype),
        grid_spec=pltpu.PrefetchScalarGridSpec(
            num_scalar_prefetch=0,
            grid=grid,
            in_specs=[
                # X tile: varies with (i, k) only.
                pl.BlockSpec((tm, tk), lambda i, j, k: (i, k)),
                # Fused weight tile: varies with (k, j).
                pl.BlockSpec((tk, tn), lambda i, j, k: (k, j)),
                # Fused bias row: constant over k -> stays resident in VMEM.
                pl.BlockSpec((1, tn), lambda i, j, k: (0, j)),
            ],
            out_specs=pl.BlockSpec((tm, tn), lambda i, j, k: (i, j)),
            scratch_shapes=[pltpu.VMEM((tm, tn), jnp.float32)],
        ),
        compiler_params=pltpu.CompilerParams(
            # M/N parallel (megacore sharding on v7x), K is the reduction.
            dimension_semantics=("parallel", "parallel", "arbitrary"),
            vmem_limit_bytes=vmem_limit,
        ),
        cost_estimate=cost,
    )(x_c, w_c, b_all)

    if (M_p, N_p) != (B, N):
        out = out[:B, :N]
    return out


def multihead_adapter_forward(
    x, weights_pt, biases_pt, *, compute_dtype=None, out_dtype=None
):
    """API-parity wrapper matching PyTorch MultiHeadAdapter.forward: returns a
    Python list of per-head (B, D_out) outputs.

    Perf note: the fused (B, H*D_out) array from `multihead_adapter_fused` is
    the efficient interface — the per-head split below is done once, only at
    this PyTorch-parity boundary (a single reshape + H views of it)."""
    H, D_out, _ = weights_pt.shape
    fused = multihead_adapter_fused(
        x, weights_pt, biases_pt, compute_dtype=compute_dtype, out_dtype=out_dtype
    )
    out = fused.reshape(x.shape[0], H, D_out)
    return [out[:, h, :] for h in range(H)]


def _reference_forward(x, weights_pt, biases_pt):
    """Pure-JAX reference: [X @ W_h^T + b_h for each head] (PyTorch layout)."""
    return [
        x @ weights_pt[h].T + biases_pt[h] for h in range(weights_pt.shape[0])
    ]


# ----------------------------------------------------------------------------
# Demo / self-test
# ----------------------------------------------------------------------------
if __name__ == "__main__":
    # --- small case (matches a typical 3-head regression/classification adapter)
    num_heads = 3
    B, D_in, D_out = 8, 32, 16

    key = jax.random.PRNGKey(0)
    kx, kw, kb, kx2, kw2, kb2 = jax.random.split(key, 6)

    x = jax.random.normal(kx, (B, D_in), dtype=jnp.float32)
    # PyTorch nn.Linear stores W as (D_out, D_in); keep that layout and let the
    # wrapper do the one-time fuse/transpose.
    w_pt = jax.random.normal(kw, (num_heads, D_out, D_in), dtype=jnp.float32) * 0.05
    b_pt = jax.random.normal(kb, (num_heads, D_out), dtype=jnp.float32) * 0.05

    refs = _reference_forward(x, w_pt, b_pt)

    # f32 streaming path — tight tolerance against the reference.
    outs = multihead_adapter_forward(x, w_pt, b_pt)
    outs = [jax.block_until_ready(o) for o in outs]
    for o, r in zip(outs, refs):
        assert o.shape == (B, D_out)
        assert o.dtype == jnp.float32
        assert jnp.allclose(o, r, atol=1e-5, rtol=1e-5)

    # bf16 streaming path (halves weight/activation HBM bytes); accumulation
    # and bias stay f32 in-kernel and outputs stay f32 via out_dtype.
    outs_bf16 = multihead_adapter_forward(
        x, w_pt, b_pt, compute_dtype=jnp.bfloat16, out_dtype=jnp.float32
    )
    outs_bf16 = [jax.block_until_ready(o) for o in outs_bf16]
    for o, r in zip(outs_bf16, refs):
        assert o.shape == (B, D_out)
        assert o.dtype == jnp.float32
        assert jnp.allclose(o, r, atol=5e-2, rtol=5e-2)

    # --- larger, unaligned case: exercises M/N/K padding, multi-block M grid
    # and the K-axis accumulator loop.
    H2, B2, D_in2, D_out2 = 5, 600, 700, 40
    x2 = jax.random.normal(kx2, (B2, D_in2), dtype=jnp.float32)
    w2 = jax.random.normal(kw2, (H2, D_out2, D_in2), dtype=jnp.float32) * 0.02
    b2 = jax.random.normal(kb2, (H2, D_out2), dtype=jnp.float32) * 0.02

    fused2 = jax.block_until_ready(multihead_adapter_fused(x2, w2, b2))
    ref2 = jnp.concatenate(_reference_forward(x2, w2, b2), axis=1)
    assert fused2.shape == (B2, H2 * D_out2)
    assert jnp.allclose(fused2, ref2, atol=1e-3, rtol=1e-3)

    print("KERNEL_OK")
</pallas_src>

<mosaic_0001>
module attributes {stable_mosaic.version = 11 : i64} {
  func.func @_fused_heads_matmul_kernel(%arg0: i32, %arg1: i32, %arg2: i32, %arg3: memref<8x128xf32, #tpu.memory_space<vmem>>, %arg4: memref<128x128xf32, #tpu.memory_space<vmem>>, %arg5: memref<1x128xf32, #tpu.memory_space<vmem>>, %arg6: memref<8x128xf32, #tpu.memory_space<vmem>>, %arg7: memref<8x128xf32, #tpu.memory_space<vmem>>) attributes {dimension_semantics = [#tpu.dimension_semantics<parallel>, #tpu.dimension_semantics<parallel>, #tpu.dimension_semantics<arbitrary>], iteration_bounds = array<i64: 1, 1, 1>, scalar_prefetch = 0 : i64, scratch_operands = 1 : i64, tpu.core_type = #tpu.core_type<tc>, window_params = [{transform_indices = @transform_0, window_bounds = array<i64: 8, 128>}, {transform_indices = @transform_1, window_bounds = array<i64: 128, 128>}, {transform_indices = @transform_2, window_bounds = array<i64: 1, 128>}, {transform_indices = @transform_3, window_bounds = array<i64: 8, 128>}]} {
    %c0_i32 = arith.constant 0 : i32
    %0 = arith.cmpi eq, %arg2, %c0_i32 : i32
    %1 = arith.extui %0 : i1 to i32
    %c0_i32_0 = arith.constant 0 : i32
    %2 = arith.cmpi ne, %1, %c0_i32_0 : i32
    scf.if %2 {
      %c0_10 = arith.constant 0 : index
      %c0_11 = arith.constant 0 : index
      %12 = vector.load %arg5[%c0_10, %c0_11] : memref<1x128xf32, #tpu.memory_space<vmem>>, vector<1x128xf32>
      %13 = vector.shape_cast %12 : vector<1x128xf32> to vector<1x128xf32>
      %14 = vector.broadcast %13 : vector<1x128xf32> to vector<8x128xf32>
      %c0_12 = arith.constant 0 : index
      %c0_13 = arith.constant 0 : index
      %15 = vector.load %arg7[%c0_12, %c0_13] : memref<8x128xf32, #tpu.memory_space<vmem>>, vector<8x128xf32>
      tpu.vector_store %arg7[%c0_12, %c0_13], %14 {strides = array<i32>} : memref<8x128xf32, #tpu.memory_space<vmem>>, vector<8x128xf32>,
    } else {
    }
    %c0 = arith.constant 0 : index
    %c0_1 = arith.constant 0 : index
    %3 = vector.load %arg7[%c0, %c0_1] : memref<8x128xf32, #tpu.memory_space<vmem>>, vector<8x128xf32>
    %c0_2 = arith.constant 0 : index
    %c0_3 = arith.constant 0 : index
    %4 = vector.load %arg3[%c0_2, %c0_3] : memref<8x128xf32, #tpu.memory_space<vmem>>, vector<8x128xf32>
    %c0_4 = arith.constant 0 : index
    %c0_5 = arith.constant 0 : index
    %5 = vector.load %arg4[%c0_4, %c0_5] : memref<128x128xf32, #tpu.memory_space<vmem>>, vector<128x128xf32>
    %cst = arith.constant dense<0.000000e+00> : vector<8x128xf32>
    %6 = tpu.matmul %4, %5, %cst {dimension_numbers = #tpu.dot_dimension_numbers<[1], [0], [0], [1], [0, 0, 1, 1], [], []>} : vector<8x128xf32>, vector<128x128xf32>, vector<8x128xf32> -> vector<8x128xf32>
    %7 = arith.addf %3, %6 : vector<8x128xf32>
    %c0_6 = arith.constant 0 : index
    %c0_7 = arith.constant 0 : index
    %8 = vector.load %arg7[%c0_6, %c0_7] : memref<8x128xf32, #tpu.memory_space<vmem>>, vector<8x128xf32>
    tpu.vector_store %arg7[%c0_6, %c0_7], %7 {strides = array<i32>} : memref<8x128xf32, #tpu.memory_space<vmem>>, vector<8x128xf32>,
    %c0_i32_8 = arith.constant 0 : i32
    %9 = arith.cmpi eq, %arg2, %c0_i32_8 : i32
    %10 = arith.extui %9 : i1 to i32
    %c0_i32_9 = arith.constant 0 : i32
    %11 = arith.cmpi ne, %10, %c0_i32_9 : i32
    scf.if %11 {
      %c0_10 = arith.constant 0 : index
      %c0_11 = arith.constant 0 : index
      %12 = vector.load %arg7[%c0_10, %c0_11] : memref<8x128xf32, #tpu.memory_space<vmem>>, vector<8x128xf32>
      %c0_12 = arith.constant 0 : index
      %c0_13 = arith.constant 0 : index
      %13 = vector.load %arg6[%c0_12, %c0_13] : memref<8x128xf32, #tpu.memory_space<vmem>>, vector<8x128xf32>
      tpu.vector_store %arg6[%c0_12, %c0_13], %12 {strides = array<i32>} : memref<8x128xf32, #tpu.memory_space<vmem>>, vector<8x128xf32>,
    } else {
    }
    return
  }
  func.func @transform_0(%arg0: i32, %arg1: i32, %arg2: i32) -> (i32, i32) {
    %c0_i32 = arith.constant 0 : i32
    return %arg0, %arg2 : i32, i32
  }
  func.func @transform_1(%arg0: i32, %arg1: i32, %arg2: i32) -> (i32, i32) {
    %c0_i32 = arith.constant 0 : i32
    return %arg2, %arg1 : i32, i32
  }
  func.func @transform_2(%arg0: i32, %arg1: i32, %arg2: i32) -> (i32, i32) {
    %c0_i32 = arith.constant 0 : i32
    %c0_i32_0 = arith.constant 0 : i32
    return %c0_i32, %arg1 : i32, i32
  }
  func.func @transform_3(%arg0: i32, %arg1: i32, %arg2: i32) -> (i32, i32) {
    %c0_i32 = arith.constant 0 : i32
    return %arg0, %arg1 : i32, i32
  }
}

</mosaic_0001>

<bundles_post_ra>
// kernel: tpu_custom_call.1
= control target key start
LH: loop header
LB: loop body
LE: loop exit
PB: predicated region body
PF: predicated region fallthrough
CT: control target
= control target key end

     0   :  { %8 = vsyncpa [#allocation4], 0  ;;  %s395_s0 = inlined_call_operand.hbm [shape: f32[8,128], index: 0, kind: input, shape index: {}]   ;;  %s396_s1 = inlined_call_operand.hbm [shape: f32[128,128], index: 1, kind: input, shape index: {}]   ;;  %s397_s2 = inlined_call_operand.vmem [shape: f32[1,128], index: 2, kind: input, shape index: {}]   ;;  %s398_s3 = inlined_call_operand.hbm [shape: f32[8,128], index: 3, kind: output, shape index: {}]  }
   0x1   :  { %9 = vsyncpa [#allocation7], 0 }
   0x2   :  { %10 = vsyncpa [#allocation5], 0  ;;  %s321_s12 = smov [#allocation3]   ;;  %s322_s14 = smov [#allocation6]  }
   0x3   :  { %s17_s13 = sshll.u32 %s321_s12, 4  ;;  %s26_s15 = sshll.u32 %s322_s14, 4  ;;  %s18_s13 = int_to_ptr.vmem [resolvable:$true] %s17_s13  ;;  %s349_s15 = int_to_ptr.vmem [resolvable:$true] %s26_s15 }
   0x4   :  { %s249_s18 = scalar_lea.hbm %s395_s0, 128 }
   0x5   :  { %p250_p0 = scmp.ne.s32.totalorder %s395_s0, %s249_s18  ;;  %p253_p1 = scmp.lt.u32.totalorder %s249_s18, %s395_s0 }
   0x7   :  { %p255_p2 = pnand %p253_p1, %p250_p0 }
   0x9   :  { %258 = shalt.err (!%p255_p2)
}
   0xa   :  { %s259_s23 = scalar_lea.vmem %s18_s13, 128  ;;  %p264_p4 = scmp.lt.s32.totalorder %s18_s13, %s18_s13 }
   0xb   :  { %p260_p3 = scmp.ne.s32.totalorder %s18_s13, %s259_s23  ;;  %p265_p5 = scmp.lt.s32.totalorder %s259_s23, %s259_s23 }
   0xd   :  { %p266_p6 = por %p265_p5, %p264_p4 }
   0xf   :  { %p267_p7 = pnand %p266_p6, %p260_p3 }
  0x11   :  { %270 = shalt.err (!%p267_p7)
}
  0x12   :  { %20 = dma.hbm_to_vmem [thread:$0]  %s395_s0, 128, %s18_s13, [#allocation4]  }
  0x13   :  { %s271_s28 = scalar_lea.hbm %s396_s1, 2048 }
  0x14   :  { %p272_p8 = scmp.ne.s32.totalorder %s396_s1, %s271_s28  ;;  %p275_p9 = scmp.lt.u32.totalorder %s271_s28, %s396_s1 }
  0x16   :  { %p277_p10 = pnand %p275_p9, %p272_p8 }
  0x18   :  { %280 = shalt.err (!%p277_p10)
}
  0x19   :  { %s281_s6 = scalar_lea.vmem %s349_s15, 2048  ;;  %p286_p12 = scmp.lt.s32.totalorder %s349_s15, %s349_s15 }
  0x1a   :  { %p282_p11 = scmp.ne.s32.totalorder %s349_s15, %s281_s6  ;;  %p287_p13 = scmp.lt.s32.totalorder %s281_s6, %s281_s6 }
  0x1c   :  { %p288_p0 = por %p287_p13, %p286_p12 }
  0x1e   :  { %p289_p1 = pnand %p288_p0, %p282_p11 }
  0x20   :  { %292 = shalt.err (!%p289_p1)
}
  0x21   :  { %s323_s0 = smov 128   ;;  %s324_s7 = smov 8  }
  0x22   :  { %32 = dma.hbm_to_vmem [thread:$0]  %s396_s1, 2048, %s349_s15, [#allocation7], %s323_s0, %s323_s0, %s324_s7  }
  0x23   :  { %315 = dma.done.wait [#allocation4], 128  }
  0x24   :  { %316 = vsyncadd [#allocation4], 4294967168 }
  0x25   :  { %317 = dma.done.wait [#allocation7], 2048  }
  0x26   :  { %318 = vsyncadd [#allocation7], 4294965248  ;;  %v325_v0 = vmov 0.0|0.0   ;;  %vm326_vm0 = vmmov 0   ;;  %v327_v1 = vmov 0.0   ;;  %v55_v2 = vld [vmem:[#allocation6] sm:$0xff] }
  0x27   :  { %217 = vmatprep.subr.bf16.mxu0 %v325_v0  ;;  %214 = vmatprep.mubr.msk.f32.mxu0 %vm326_vm0, %v327_v1  ;;  %v56_v3 = vld [vmem:[#allocation6 + $0x8] sm:$0xff]  ;;  %v57_v4 = vld [vmem:[#allocation6 + $0x10] sm:$0xff]  ;;  %v58_v6 = vld [vmem:[#allocation6 + $0x18] sm:$0xff]  ;;  %s328_s11 = smov [#allocation8]  }
  0x28   :  { %v218_v5 = vpack.c.bf16 %v56_v3, %v55_v2  ;;  %v221_v7 = vpack.c.bf16 %v58_v6, %v57_v4  ;;  %v59_v8 = vld [vmem:[#allocation6 + $0x20] sm:$0xff]  ;;  %v60_v9 = vld [vmem:[#allocation6 + $0x28] sm:$0xff]  ;;  %v61_v11 = vld [vmem:[#allocation6 + $0x30] sm:$0xff]  ;;  %s154_s12 = sshll.u32 %s328_s11, 4  ;;  %s155_s12 = int_to_ptr.vmem [resolvable:$true] %s154_s12 }
  0x29   :  { %v224_v10 = vpack.c.bf16 %v60_v9, %v59_v8  ;;  %v62_v12 = vld [vmem:[#allocation6 + $0x38] sm:$0xff]  ;;  %v63_v14 = vld [vmem:[#allocation6 + $0x40] sm:$0xff]  ;;  %v64_v15 = vld [vmem:[#allocation6 + $0x48] sm:$0xff]  ;;  %s293_s13 = scalar_lea.vmem %s155_s12, 128  ;;  %p298_p3 = scmp.lt.s32.totalorder %s155_s12, %s155_s12 }
  0x2a   :  { %219 = vmatpush3.bf16.msra.mxu0 %v218_v5  ;;  %v227_v13 = vpack.c.bf16 %v62_v12, %v61_v11  ;;  %v230_v16 = vpack.c.bf16 %v64_v15, %v63_v14  ;;  %v65_v17 = vld [vmem:[#allocation6 + $0x50] sm:$0xff]  ;;  %v66_v18 = vld [vmem:[#allocation6 + $0x58] sm:$0xff]  ;;  %v67_v20 = vld [vmem:[#allocation6 + $0x60] sm:$0xff]  ;;  %p294_p2 = scmp.ne.s32.totalorder %s155_s12, %s293_s13  ;;  %p299_p4 = scmp.lt.s32.totalorder %s293_s13, %s293_s13 }
  0x2b   :  { %220 = vmatprep.subr.bf16.mxu0 %v325_v0  ;;  %v233_v19 = vpack.c.bf16 %v66_v18, %v65_v17  ;;  %v68_v21 = vld [vmem:[#allocation6 + $0x68] sm:$0xff]  ;;  %v69_v23 = vld [vmem:[#allocation6 + $0x70] sm:$0xff]  ;;  %v70_v24 = vld [vmem:[#allocation6 + $0x78] sm:$0xff] }
  0x2c   :  { %v236_v22 = vpack.c.bf16 %v68_v21, %v67_v20  ;;  %v239_v25 = vpack.c.bf16 %v70_v24, %v69_v23  ;;  %v54_v26 = vld [vmem:[#allocation3] sm:$0xff]  ;;  %p300_p5 = por %p299_p4, %p298_p3 }
  0x2d   :  { %v164_v27 = vld [vmem:[%s397_s2] ss:$0 sm:$0xff] }
  0x2e   :  { %222 = vmatpush3.bf16.msra.mxu0 %v221_v7  ;;  %p301_p6 = pnand %p300_p5, %p294_p2 }
  0x2f   :  { %223 = vmatprep.subr.bf16.mxu0 %v325_v0 }
  0x32   :  { %225 = vmatpush3.bf16.msra.mxu0 %v224_v10 }
  0x33   :  { %226 = vmatprep.subr.bf16.mxu0 %v325_v0 }
  0x36   :  { %228 = vmatpush3.bf16.msra.mxu0 %v227_v13 }
  0x37   :  { %229 = vmatprep.subr.bf16.mxu0 %v325_v0 }
  0x3a   :  { %231 = vmatpush3.bf16.msra.mxu0 %v230_v16 }
  0x3b   :  { %232 = vmatprep.subr.bf16.mxu0 %v325_v0 }
  0x3e   :  { %234 = vmatpush3.bf16.msra.mxu0 %v233_v19 }
  0x3f   :  { %235 = vmatprep.subr.bf16.mxu0 %v325_v0 }
  0x42   :  { %237 = vmatpush3.bf16.msra.mxu0 %v236_v22 }
  0x43   :  { %238 = vmatprep.subr.bf16.mxu0 %v325_v0 }
  0x46   :  { %240 = vmatpush3.bf16.msra.mxu0 %v239_v25 }
  0x49   :  { %215 = vmatmul.mubr.f32.vlgmr.msra.gmra.mrb[0].mxu0 %v54_v26 }
 0x11c   :  { %v137_v28 = vpop.f32.mrb[0].mxu0 }
 0x11d   :  { %v141_v29 = vadd.f32 %v164_v27, %v137_v28  ;;  %v216_v30 = vpop.f32.mrb[1].mxu0 }
 0x11f   :  { %147 = vst [vmem:[#allocation8] sm:$0xff] %v141_v29 }
 0x120   :  { %304 = shalt.err (!%p301_p6)
}
 0x121   :  { %s305_s16 = scalar_lea.hbm %s398_s3, 128 }
 0x122   :  { %p306_p7 = scmp.ne.s32.totalorder %s398_s3, %s305_s16  ;;  %p309_p8 = scmp.lt.u32.totalorder %s305_s16, %s398_s3 }
 0x124   :  { %p311_p9 = pnand %p309_p8, %p306_p7 }
 0x126   :  { %314 = shalt.err (!%p311_p9)
}
 0x127   :  { %157 = dma.vmem_to_hbm [thread:$0]  %s155_s12, 128, %s398_s3, [#allocation5]  }
 0x128   :  { %319 = dma.done.wait [#allocation5], 128  }
 0x129   :  { %320 = vsyncadd [#allocation5], 4294967168 }
 0x12a   :  { %161 = vsyncpa [#allocation4], 1 }
 0x12b   :  { %162 = vsyncpa [#allocation7], 1 }
 0x12c   :  { %163 = vsyncpa [#allocation5], 1 }

</bundles_post_ra>
